<compile_context>
chip_gen: v7x
topology: tpu7x:2x2x1
jax: 0.10.0
libtpu: 0.0.40
codegen_flags: <defaults>
</compile_context>

<pallas_src>
import numpy as np
import jax
import jax.numpy as jnp
from jax.experimental import pallas as pl
from jax.experimental.pallas import tpu as pltpu

LAMBDA_GIOU = 10.0
LAMBDA_L1 = 1.0
EPS = 1e-8


def _round_up(x, m):
    return (x + m - 1) // m * m


# ---------------------------------------------------------------------------
# Pallas kernel: transposed matching-cost block (Bb, Nt_pad, Ns_pad) per step.
# Padded rows/columns carry garbage-but-finite values and are sliced off on
# the host before the Hungarian assignment.
# ---------------------------------------------------------------------------
def _cost_matrix_kernel(logits_ref, tclass_ref, sboxT_ref, tbox_ref, cost_ref):
    logits = logits_ref[...]     # (Bb, Ns, C)      f32, unpadded
    tclass = tclass_ref[...]     # (Bb, Nt_pad, 1)  i32, -1 in padded rows
    sboxT = sboxT_ref[...]       # (Bb, 4, Ns_pad)  f32, zeros in padded cols
    tbox = tbox_ref[...]         # (Bb, Nt_pad, 4)  f32, zeros in padded rows

    Bb, Ns, C = logits.shape
    Ns_pad = sboxT.shape[-1]

    # ---- cross-entropy cost: lse(logits_s) - logits_s[class_t] ------------
    m = jnp.max(logits, axis=-1, keepdims=True)                     # (Bb,Ns,1)
    lse = m + jnp.log(jnp.sum(jnp.exp(logits - m), axis=-1, keepdims=True))
    shifted = lse - logits                                           # (Bb,Ns,C)
    if Ns_pad != Ns:
        # pad sources to the lane-dense output width (VMEM-only, no HBM pass)
        shifted = jnp.concatenate(
            [shifted, jnp.zeros((Bb, Ns_pad - Ns, C), shifted.dtype)], axis=1)
    shifted = shifted.astype(jnp.bfloat16)                           # (Bb,Ns_pad,C)

    cls_iota = jax.lax.broadcasted_iota(jnp.int32, (1, 1, C), 2)
    onehot = (cls_iota == tclass).astype(jnp.bfloat16)               # (Bb,Nt_pad,C)
    # one-hot rows sum to 1 for valid classes, so lse folds into the matmul:
    #   ce[b,t,s] = sum_c onehot[b,t,c] * (lse[b,s] - logits[b,s,c])
    loss_ce = jnp.einsum("btc,bsc->bts", onehot, shifted,
                         preferred_element_type=jnp.float32)         # (Bb,Nt_pad,Ns_pad)

    # ---- pairwise box costs (corner format x1,y1,x2,y2) -------------------
    sx1 = sboxT[:, 0:1, :]; sy1 = sboxT[:, 1:2, :]
    sx2 = sboxT[:, 2:3, :]; sy2 = sboxT[:, 3:4, :]                   # (Bb,1,Ns_pad)
    tx1 = tbox[:, :, 0:1]; ty1 = tbox[:, :, 1:2]
    tx2 = tbox[:, :, 2:3]; ty2 = tbox[:, :, 3:4]                     # (Bb,Nt_pad,1)

    # pairwise min/max reused for intersection, enclosing box and the L1 term
    min_x1 = jnp.minimum(sx1, tx1); max_x1 = jnp.maximum(sx1, tx1)
    min_y1 = jnp.minimum(sy1, ty1); max_y1 = jnp.maximum(sy1, ty1)
    min_x2 = jnp.minimum(sx2, tx2); max_x2 = jnp.maximum(sx2, tx2)
    min_y2 = jnp.minimum(sy2, ty2); max_y2 = jnp.maximum(sy2, ty2)

    iw = jnp.maximum(min_x2 - max_x1, 0.0)
    ih = jnp.maximum(min_y2 - max_y1, 0.0)
    inter = iw * ih                                                  # (Bb,Nt_pad,Ns_pad)
    area_s = (sx2 - sx1) * (sy2 - sy1)
    area_t = (tx2 - tx1) * (ty2 - ty1)
    union = area_s + area_t - inter
    # exact division (not approx reciprocal) so near-tie assignments match
    iou = inter / (union + EPS)
    area_c = (max_x2 - min_x1) * (max_y2 - min_y1)
    giou = iou - (area_c - union) / (area_c + EPS)

    # L1: |a-b| = max(a,b) - min(a,b), reusing the min/max computed above
    l1 = ((max_x1 - min_x1) + (max_y1 - min_y1)
          + (max_x2 - min_x2) + (max_y2 - min_y2))

    # single fused combine: ce + LAMBDA_GIOU*(1-giou) + LAMBDA_L1*(l1/4)
    cost_ref[...] = (loss_ce + LAMBDA_GIOU
                     - LAMBDA_GIOU * giou
                     + (0.25 * LAMBDA_L1) * l1)


# ---------------------------------------------------------------------------
# Generation-aware block-size / VMEM budgeting.
# ---------------------------------------------------------------------------
def _tpu_generation_info():
    """Returns (physical VMEM bytes, dual_tensorcore?)."""
    kind = ""
    try:
        kind = jax.devices()[0].device_kind.lower()
    except Exception:
        pass
    dual_tc = "v7" in kind
    vmem = None
    get_info = getattr(pltpu, "get_tpu_info", None)
    if get_info is not None:
        try:
            info = get_info()
            for attr in ("vmem_capacity_bytes", "vmem_size_bytes", "vmem_bytes"):
                v = getattr(info, attr, None)
                if v:
                    vmem = int(v)
                    break
        except Exception:
            vmem = None
    if vmem is None:
        vmem = (64 << 20) if dual_tc else (128 << 20)
    return vmem, dual_tc


def _per_batch_vmem_bytes(Ns, C, Nt_pad, Ns_pad):
    """Per-batch VMEM footprint of one grid step, counting (8,128) tile
    padding of every pipeline block plus the live in-kernel intermediates."""
    Ns8, C128 = _round_up(Ns, 8), _round_up(C, 128)
    # double-buffered pipeline blocks (inputs + output), tile-padded
    block_words = (Ns8 * C128           # logits  (Bb, Ns, C)
                   + Nt_pad * 128       # tclass  (Bb, Nt_pad, 1) lane-padded
                   + 8 * Ns_pad         # sboxT   (Bb, 4, Ns_pad) sublane-padded
                   + Nt_pad * 128       # tbox    (Bb, Nt_pad, 4) lane-padded
                   + Nt_pad * Ns_pad)   # cost output
    blocks = 2 * 4 * block_words        # x2 double buffering, 4-byte words
    # live intermediates inside the kernel body (conservative)
    inter = (4 * Ns8 * C128             # lse-shifted logits (f32)
             + 4 * Ns_pad * C128        # padded to Ns_pad (f32)
             + 2 * Ns_pad * C128        # bf16 cast of the padded logits
             + 2 * Nt_pad * C128        # one-hot (bf16)
             + 4 * 8 * Nt_pad * Ns_pad)  # CE result + box-cost temporaries (f32)
    return blocks + inter


def _pick_block_b(B, per_batch_bytes, vmem_bytes, dual_tc):
    # generation-aware per-step footprint budget
    budget = (24 << 20) if dual_tc else (48 << 20)
    budget = min(budget, int(vmem_bytes * 0.45))
    bb = max(1, min(B, budget // max(per_batch_bytes, 1)))
    while B % bb:                      # divisor of B -> no batch padding
        bb -= 1
    if dual_tc and bb > 1 and (B // bb) % 2 == 1:
        # prefer an even number of grid steps so both TensorCores get
        # balanced work under dimension_semantics=("parallel",)
        cand = bb - 1
        while cand >= 1:
            if B % cand == 0 and (B // cand) % 2 == 0:
                bb = cand
                break
            cand -= 1
    return int(bb)


# ---------------------------------------------------------------------------
# Wrapper: transposed, padded (B, Nt_pad, Ns_pad) cost tensor on device.
# ---------------------------------------------------------------------------
def compute_cost_matrices_t(source_class_logits, target_classes, source_boxes,
                            target_boxes, block_b=None):
    B, Ns, C = source_class_logits.shape
    _, Nt = target_classes.shape

    Nt_pad = _round_up(Nt, 8)      # sublane axis of the output
    Ns_pad = _round_up(Ns, 128)    # lane axis of the output (lane-dense vst)

    f32 = jnp.float32
    logits = source_class_logits.astype(f32)                       # unpadded
    # Only the tiny class / box tensors are padded on device.
    tclass_p = jnp.full((B, Nt_pad, 1), -1, jnp.int32).at[:, :Nt, 0].set(
        target_classes.astype(jnp.int32))
    sboxT_p = jnp.zeros((B, 4, Ns_pad), f32).at[:, :, :Ns].set(
        jnp.swapaxes(source_boxes.astype(f32), 1, 2))
    tbox_p = jnp.zeros((B, Nt_pad, 4), f32).at[:, :Nt, :].set(
        target_boxes.astype(f32))

    per_batch = _per_batch_vmem_bytes(Ns, C, Nt_pad, Ns_pad)
    vmem_bytes, dual_tc = _tpu_generation_info()
    if block_b is None:
        block_b = _pick_block_b(B, per_batch, vmem_bytes, dual_tc)
    block_b = max(1, min(int(block_b), B))
    while B % block_b:
        block_b -= 1

    per_step = block_b * per_batch
    vmem_limit = int(min(vmem_bytes * 3 // 4,
                         max(32 << 20, per_step + (8 << 20))))

    grid = (B // block_b,)
    cost_t = pl.pallas_call(
        _cost_matrix_kernel,
        out_shape=jax.ShapeDtypeStruct((B, Nt_pad, Ns_pad), f32),
        grid=grid,
        in_specs=[
            pl.BlockSpec((block_b, Ns, C), lambda b: (b, 0, 0)),
            pl.BlockSpec((block_b, Nt_pad, 1), lambda b: (b, 0, 0)),
            pl.BlockSpec((block_b, 4, Ns_pad), lambda b: (b, 0, 0)),
            pl.BlockSpec((block_b, Nt_pad, 4), lambda b: (b, 0, 0)),
        ],
        out_specs=pl.BlockSpec((block_b, Nt_pad, Ns_pad), lambda b: (b, 0, 0)),
        compiler_params=pltpu.CompilerParams(
            dimension_semantics=("parallel",),
            vmem_limit_bytes=vmem_limit),
    )(logits, tclass_p, sboxT_p, tbox_p)
    return cost_t   # transposed + padded; slice on the host


# ---------------------------------------------------------------------------
# Host-side Hungarian algorithm.
# TODO(synk): linear_sum_assignment is sequential/data-dependent; no Pallas
# equivalent. Use scipy's C implementation when available.
# ---------------------------------------------------------------------------
try:
    from scipy.optimize import linear_sum_assignment as _scipy_lsa
except Exception:  # pragma: no cover
    _scipy_lsa = None


def _linear_sum_assignment_py(cost):
    cost = np.asarray(cost, dtype=np.float64)
    transposed = False
    if cost.shape[0] > cost.shape[1]:
        cost = cost.T
        transposed = True
    n, m = cost.shape  # n <= m
    INF = float("inf")
    u = np.zeros(n + 1)
    v = np.zeros(m + 1)
    p = np.zeros(m + 1, dtype=np.int64)
    way = np.zeros(m + 1, dtype=np.int64)
    for i in range(1, n + 1):
        p[0] = i
        j0 = 0
        minv = np.full(m + 1, INF)
        used = np.zeros(m + 1, dtype=bool)
        while True:
            used[j0] = True
            i0 = p[j0]
            delta = INF
            j1 = -1
            for j in range(1, m + 1):
                if not used[j]:
                    cur = cost[i0 - 1, j - 1] - u[i0] - v[j]
                    if cur < minv[j]:
                        minv[j] = cur
                        way[j] = j0
                    if minv[j] < delta:
                        delta = minv[j]
                        j1 = j
            for j in range(m + 1):
                if used[j]:
                    u[p[j]] += delta
                    v[j] -= delta
                else:
                    minv[j] -= delta
            j0 = j1
            if p[j0] == 0:
                break
        while True:
            j1 = way[j0]
            p[j0] = p[j1]
            j0 = j1
            if j0 == 0:
                break
    rows, cols = [], []
    for j in range(1, m + 1):
        if p[j] != 0:
            rows.append(p[j] - 1)
            cols.append(j - 1)
    rows = np.asarray(rows, dtype=np.int64)
    cols = np.asarray(cols, dtype=np.int64)
    if transposed:
        rows, cols = cols, rows
    order = np.argsort(rows)
    return rows[order], cols[order]


def linear_sum_assignment(cost):
    if _scipy_lsa is not None:
        r, c = _scipy_lsa(np.asarray(cost))
        return np.asarray(r), np.asarray(c)
    return _linear_sum_assignment_py(cost)


def hungarian_loss(source_class_logits, target_classes, source_boxes, target_boxes):
    """Forward pass of HungarianLoss. Returns a (B,) array of per-batch losses."""
    B, Ns, _ = source_class_logits.shape
    _, Nt = target_classes.shape
    cost_t = compute_cost_matrices_t(source_class_logits, target_classes,
                                     source_boxes, target_boxes)
    # Padded (transposed) tensor goes straight to the host; padding is sliced
    # off here with numpy (no extra on-device slice pass).
    cost_host = np.asarray(jax.device_get(cost_t))     # (B, Nt_pad, Ns_pad)
    losses = []
    for b in range(B):
        c = cost_host[b, :Nt, :Ns]                     # rows=targets, cols=sources
        row_idx, col_idx = linear_sum_assignment(c)    # same optimum as transpose
        losses.append(c[row_idx, col_idx].mean())
    return jnp.asarray(np.stack(losses).astype(np.float32))


# ---------------------------------------------------------------------------
# Pure-JAX reference for the (B, Ns, Nt) cost matrix (sanity check).
# ---------------------------------------------------------------------------
def _cost_matrix_ref(logits, tclass, sbox, tbox):
    B, Ns, C = logits.shape
    Nt = tclass.shape[1]
    lse = jax.nn.logsumexp(logits, axis=-1)                            # (B, Ns)
    picked = jnp.take_along_axis(
        logits[:, :, None, :].repeat(Nt, axis=2),
        tclass[:, None, :, None].repeat(Ns, axis=1), axis=-1)[..., 0]  # (B, Ns, Nt)
    ce = lse[:, :, None] - picked

    s = sbox[:, :, None, :]   # (B, Ns, 1, 4)
    t = tbox[:, None, :, :]   # (B, 1, Nt, 4)
    iw = jnp.maximum(jnp.minimum(s[..., 2], t[..., 2]) - jnp.maximum(s[..., 0], t[..., 0]), 0.0)
    ih = jnp.maximum(jnp.minimum(s[..., 3], t[..., 3]) - jnp.maximum(s[..., 1], t[..., 1]), 0.0)
    inter = iw * ih
    area_s = (s[..., 2] - s[..., 0]) * (s[..., 3] - s[..., 1])
    area_t = (t[..., 2] - t[..., 0]) * (t[..., 3] - t[..., 1])
    union = area_s + area_t - inter
    iou = inter / (union + EPS)
    cw = jnp.maximum(s[..., 2], t[..., 2]) - jnp.minimum(s[..., 0], t[..., 0])
    ch = jnp.maximum(s[..., 3], t[..., 3]) - jnp.minimum(s[..., 1], t[..., 1])
    area_c = cw * ch
    giou = iou - (area_c - union) / (area_c + EPS)
    l1 = jnp.abs(s - t).mean(axis=-1)
    return ce + LAMBDA_GIOU * (1.0 - giou) + LAMBDA_L1 * l1


if __name__ == "__main__":
    key = jax.random.PRNGKey(0)
    B, Ns, Nt, C = 2, 8, 8, 16

    k1, k2, k3, k4, k5, k6 = jax.random.split(key, 6)
    source_class_logits = jax.random.normal(k1, (B, Ns, C), dtype=jnp.float32)
    target_classes = jax.random.randint(k2, (B, Nt), 0, C, dtype=jnp.int32)

    def make_boxes(kc, kw, n):
        cxy = jax.random.uniform(kc, (B, n, 2), minval=0.2, maxval=0.8)
        wh = jax.random.uniform(kw, (B, n, 2), minval=0.1, maxval=0.3)
        return jnp.concatenate([cxy - wh / 2, cxy + wh / 2], axis=-1)  # xyxy

    source_boxes = make_boxes(k3, k4, Ns).astype(jnp.float32)
    target_boxes = make_boxes(k5, k6, Nt).astype(jnp.float32)

    # Kernel cost matrix vs pure-JAX reference (tolerance covers the bf16
    # MXU cross-entropy pick; GIoU uses exact division).
    cost_t = compute_cost_matrices_t(source_class_logits, target_classes,
                                     source_boxes, target_boxes)
    jax.block_until_ready(cost_t)
    cost_np = np.asarray(jax.device_get(cost_t))[:, :Nt, :Ns].transpose(0, 2, 1)
    ref = _cost_matrix_ref(source_class_logits, target_classes,
                           source_boxes, target_boxes)
    np.testing.assert_allclose(cost_np, np.asarray(ref), rtol=2e-2, atol=5e-2)

    losses = hungarian_loss(source_class_logits, target_classes,
                            source_boxes, target_boxes)
    jax.block_until_ready(losses)
    assert losses.shape == (B,) and bool(jnp.all(jnp.isfinite(losses)))

    print("KERNEL_OK")
</pallas_src>

<mosaic_0001>
module attributes {stable_mosaic.version = 11 : i64} {
  func.func @_cost_matrix_kernel(%arg0: i32, %arg1: memref<2x8x16xf32, #tpu.memory_space<vmem>>, %arg2: memref<2x8x1xi32, #tpu.memory_space<vmem>>, %arg3: memref<2x4x128xf32, #tpu.memory_space<vmem>>, %arg4: memref<2x8x4xf32, #tpu.memory_space<vmem>>, %arg5: memref<2x8x128xf32, #tpu.memory_space<vmem>>) attributes {dimension_semantics = [#tpu.dimension_semantics<parallel>], iteration_bounds = array<i64: 1>, scalar_prefetch = 0 : i64, scratch_operands = 0 : i64, tpu.core_type = #tpu.core_type<tc>, window_params = [{transform_indices = @transform_0, window_bounds = array<i64: 2, 8, 16>}, {transform_indices = @transform_1, window_bounds = array<i64: 2, 8, 1>}, {transform_indices = @transform_2, window_bounds = array<i64: 2, 4, 128>}, {transform_indices = @transform_3, window_bounds = array<i64: 2, 8, 4>}, {transform_indices = @transform_4, window_bounds = array<i64: 2, 8, 128>}]} {
    %c0 = arith.constant 0 : index
    %c0_0 = arith.constant 0 : index
    %c0_1 = arith.constant 0 : index
    %0 = vector.load %arg1[%c0, %c0_0, %c0_1] : memref<2x8x16xf32, #tpu.memory_space<vmem>>, vector<2x8x16xf32>
    %c0_2 = arith.constant 0 : index
    %c0_3 = arith.constant 0 : index
    %c0_4 = arith.constant 0 : index
    %1 = vector.load %arg2[%c0_2, %c0_3, %c0_4] : memref<2x8x1xi32, #tpu.memory_space<vmem>>, vector<2x8x1xi32>
    %c0_5 = arith.constant 0 : index
    %c0_6 = arith.constant 0 : index
    %c0_7 = arith.constant 0 : index
    %2 = vector.load %arg3[%c0_5, %c0_6, %c0_7] : memref<2x4x128xf32, #tpu.memory_space<vmem>>, vector<2x4x128xf32>
    %c0_8 = arith.constant 0 : index
    %c0_9 = arith.constant 0 : index
    %c0_10 = arith.constant 0 : index
    %3 = vector.load %arg4[%c0_8, %c0_9, %c0_10] : memref<2x8x4xf32, #tpu.memory_space<vmem>>, vector<2x8x4xf32>
    %cst = arith.constant dense<0xFF800000> : vector<2x8xf32>
    %4 = vector.multi_reduction <maximumf>, %0, %cst [2] : vector<2x8x16xf32> to vector<2x8xf32>
    %5 = vector.shape_cast %4 : vector<2x8xf32> to vector<2x8x1xf32>
    %6 = vector.broadcast %5 : vector<2x8x1xf32> to vector<2x8x16xf32>
    %7 = arith.subf %0, %6 : vector<2x8x16xf32>
    %8 = math.exp %7 : vector<2x8x16xf32>
    %cst_11 = arith.constant dense<0.000000e+00> : vector<2x8xf32>
    %9 = vector.multi_reduction <add>, %8, %cst_11 [2] : vector<2x8x16xf32> to vector<2x8xf32>
    %10 = vector.shape_cast %9 : vector<2x8xf32> to vector<2x8x1xf32>
    %11 = math.log %10 : vector<2x8x1xf32>
    %12 = arith.addf %5, %11 : vector<2x8x1xf32>
    %13 = vector.broadcast %12 : vector<2x8x1xf32> to vector<2x8x16xf32>
    %14 = arith.subf %13, %0 : vector<2x8x16xf32>
    %cst_12 = arith.constant 0.000000e+00 : f32
    %15 = vector.broadcast %cst_12 : f32 to vector<2x120x16xf32>
    %16 = tpu.concatenate %14, %15 in 1 : vector<2x8x16xf32>, vector<2x120x16xf32> -> vector<2x128x16xf32>
    %17 = arith.truncf %16 : vector<2x128x16xf32> to vector<2x128x16xbf16>
    %18 = tpu.iota {dimensions = array<i32: 2>} : vector<1x1x16xi32>
    %19 = vector.broadcast %18 : vector<1x1x16xi32> to vector<2x8x16xi32>
    %20 = vector.broadcast %1 : vector<2x8x1xi32> to vector<2x8x16xi32>
    %21 = arith.cmpi eq, %19, %20 : vector<2x8x16xi32>
    %22 = arith.extui %21 : vector<2x8x16xi1> to vector<2x8x16xi32>
    %23 = arith.sitofp %22 : vector<2x8x16xi32> to vector<2x8x16xf32>
    %24 = arith.truncf %23 : vector<2x8x16xf32> to vector<2x8x16xbf16>
    "tpu.trace_start"() <{level = 10 : i32, message = "btc,bsc->bts"}> : () -> ()
    %cst_13 = arith.constant dense<0.000000e+00> : vector<2x8x128xf32>
    %25 = tpu.matmul %24, %17, %cst_13 {dimension_numbers = #tpu.dot_dimension_numbers<[2], [2], [1], [1], [0, 0, 0, 1, 1, 1], [0], [0]>} : vector<2x8x16xbf16>, vector<2x128x16xbf16>, vector<2x8x128xf32> -> vector<2x8x128xf32>
    "tpu.trace_stop"() : () -> ()
    %26 = vector.extract_strided_slice %2 {offsets = [0, 0, 0], sizes = [2, 1, 128], strides = [1, 1, 1]} : vector<2x4x128xf32> to vector<2x1x128xf32>
    %27 = vector.extract_strided_slice %2 {offsets = [0, 1, 0], sizes = [2, 1, 128], strides = [1, 1, 1]} : vector<2x4x128xf32> to vector<2x1x128xf32>
    %28 = vector.extract_strided_slice %2 {offsets = [0, 2, 0], sizes = [2, 1, 128], strides = [1, 1, 1]} : vector<2x4x128xf32> to vector<2x1x128xf32>
    %29 = vector.extract_strided_slice %2 {offsets = [0, 3, 0], sizes = [2, 1, 128], strides = [1, 1, 1]} : vector<2x4x128xf32> to vector<2x1x128xf32>
    %30 = vector.extract_strided_slice %3 {offsets = [0, 0, 0], sizes = [2, 8, 1], strides = [1, 1, 1]} : vector<2x8x4xf32> to vector<2x8x1xf32>
    %31 = vector.extract_strided_slice %3 {offsets = [0, 0, 1], sizes = [2, 8, 1], strides = [1, 1, 1]} : vector<2x8x4xf32> to vector<2x8x1xf32>
    %32 = vector.extract_strided_slice %3 {offsets = [0, 0, 2], sizes = [2, 8, 1], strides = [1, 1, 1]} : vector<2x8x4xf32> to vector<2x8x1xf32>
    %33 = vector.extract_strided_slice %3 {offsets = [0, 0, 3], sizes = [2, 8, 1], strides = [1, 1, 1]} : vector<2x8x4xf32> to vector<2x8x1xf32>
    %34 = vector.broadcast %26 : vector<2x1x128xf32> to vector<2x8x128xf32>
    %35 = vector.broadcast %30 : vector<2x8x1xf32> to vector<2x8x128xf32>
    %36 = arith.minimumf %34, %35 : vector<2x8x128xf32>
    %37 = vector.broadcast %26 : vector<2x1x128xf32> to vector<2x8x128xf32>
    %38 = vector.broadcast %30 : vector<2x8x1xf32> to vector<2x8x128xf32>
    %39 = arith.maximumf %37, %38 : vector<2x8x128xf32>
    %40 = vector.broadcast %27 : vector<2x1x128xf32> to vector<2x8x128xf32>
    %41 = vector.broadcast %31 : vector<2x8x1xf32> to vector<2x8x128xf32>
    %42 = arith.minimumf %40, %41 : vector<2x8x128xf32>
    %43 = vector.broadcast %27 : vector<2x1x128xf32> to vector<2x8x128xf32>
    %44 = vector.broadcast %31 : vector<2x8x1xf32> to vector<2x8x128xf32>
    %45 = arith.maximumf %43, %44 : vector<2x8x128xf32>
    %46 = vector.broadcast %28 : vector<2x1x128xf32> to vector<2x8x128xf32>
    %47 = vector.broadcast %32 : vector<2x8x1xf32> to vector<2x8x128xf32>
    %48 = arith.minimumf %46, %47 : vector<2x8x128xf32>
    %49 = vector.broadcast %28 : vector<2x1x128xf32> to vector<2x8x128xf32>
    %50 = vector.broadcast %32 : vector<2x8x1xf32> to vector<2x8x128xf32>
    %51 = arith.maximumf %49, %50 : vector<2x8x128xf32>
    %52 = vector.broadcast %29 : vector<2x1x128xf32> to vector<2x8x128xf32>
    %53 = vector.broadcast %33 : vector<2x8x1xf32> to vector<2x8x128xf32>
    %54 = arith.minimumf %52, %53 : vector<2x8x128xf32>
    %55 = vector.broadcast %29 : vector<2x1x128xf32> to vector<2x8x128xf32>
    %56 = vector.broadcast %33 : vector<2x8x1xf32> to vector<2x8x128xf32>
    %57 = arith.maximumf %55, %56 : vector<2x8x128xf32>
    %58 = arith.subf %48, %39 : vector<2x8x128xf32>
    %cst_14 = arith.constant 0.000000e+00 : f32
    %59 = vector.broadcast %cst_14 : f32 to vector<2x8x128xf32>
    %60 = arith.maximumf %58, %59 : vector<2x8x128xf32>
    %61 = arith.subf %54, %45 : vector<2x8x128xf32>
    %cst_15 = arith.constant 0.000000e+00 : f32
    %62 = vector.broadcast %cst_15 : f32 to vector<2x8x128xf32>
    %63 = arith.maximumf %61, %62 : vector<2x8x128xf32>
    %64 = arith.mulf %60, %63 : vector<2x8x128xf32>
    %65 = arith.subf %28, %26 : vector<2x1x128xf32>
    %66 = arith.subf %29, %27 : vector<2x1x128xf32>
    %67 = arith.mulf %65, %66 : vector<2x1x128xf32>
    %68 = arith.subf %32, %30 : vector<2x8x1xf32>
    %69 = arith.subf %33, %31 : vector<2x8x1xf32>
    %70 = arith.mulf %68, %69 : vector<2x8x1xf32>
    %71 = vector.broadcast %67 : vector<2x1x128xf32> to vector<2x8x128xf32>
    %72 = vector.broadcast %70 : vector<2x8x1xf32> to vector<2x8x128xf32>
    %73 = arith.addf %71, %72 : vector<2x8x128xf32>
    %74 = arith.subf %73, %64 : vector<2x8x128xf32>
    %cst_16 = arith.constant 9.99999993E-9 : f32
    %75 = vector.broadcast %cst_16 : f32 to vector<2x8x128xf32>
    %76 = arith.addf %74, %75 : vector<2x8x128xf32>
    %77 = arith.divf %64, %76 : vector<2x8x128xf32>
    %78 = arith.subf %51, %36 : vector<2x8x128xf32>
    %79 = arith.subf %57, %42 : vector<2x8x128xf32>
    %80 = arith.mulf %78, %79 : vector<2x8x128xf32>
    %81 = arith.subf %80, %74 : vector<2x8x128xf32>
    %cst_17 = arith.constant 9.99999993E-9 : f32
    %82 = vector.broadcast %cst_17 : f32 to vector<2x8x128xf32>
    %83 = arith.addf %80, %82 : vector<2x8x128xf32>
    %84 = arith.divf %81, %83 : vector<2x8x128xf32>
    %85 = arith.subf %77, %84 : vector<2x8x128xf32>
    %86 = arith.subf %39, %36 : vector<2x8x128xf32>
    %87 = arith.subf %45, %42 : vector<2x8x128xf32>
    %88 = arith.addf %86, %87 : vector<2x8x128xf32>
    %89 = arith.subf %51, %48 : vector<2x8x128xf32>
    %90 = arith.addf %88, %89 : vector<2x8x128xf32>
    %91 = arith.subf %57, %54 : vector<2x8x128xf32>
    %92 = arith.addf %90, %91 : vector<2x8x128xf32>
    %cst_18 = arith.constant 1.000000e+01 : f32
    %93 = vector.broadcast %cst_18 : f32 to vector<2x8x128xf32>
    %94 = arith.addf %25, %93 : vector<2x8x128xf32>
    %cst_19 = arith.constant 1.000000e+01 : f32
    %95 = vector.broadcast %cst_19 : f32 to vector<2x8x128xf32>
    %96 = arith.mulf %95, %85 : vector<2x8x128xf32>
    %97 = arith.subf %94, %96 : vector<2x8x128xf32>
    %cst_20 = arith.constant 2.500000e-01 : f32
    %98 = vector.broadcast %cst_20 : f32 to vector<2x8x128xf32>
    %99 = arith.mulf %98, %92 : vector<2x8x128xf32>
    %100 = arith.addf %97, %99 : vector<2x8x128xf32>
    %c0_21 = arith.constant 0 : index
    %c0_22 = arith.constant 0 : index
    %c0_23 = arith.constant 0 : index
    %101 = vector.load %arg5[%c0_21, %c0_22, %c0_23] : memref<2x8x128xf32, #tpu.memory_space<vmem>>, vector<2x8x128xf32>
    tpu.vector_store %arg5[%c0_21, %c0_22, %c0_23], %100 {strides = array<i32>} : memref<2x8x128xf32, #tpu.memory_space<vmem>>, vector<2x8x128xf32>,
    return
  }
  func.func @transform_0(%arg0: i32) -> (i32, i32, i32) {
    %c0_i32 = arith.constant 0 : i32
    %c0_i32_0 = arith.constant 0 : i32
    %c0_i32_1 = arith.constant 0 : i32
    return %arg0, %c0_i32, %c0_i32_0 : i32, i32, i32
  }
  func.func @transform_1(%arg0: i32) -> (i32, i32, i32) {
    %c0_i32 = arith.constant 0 : i32
    %c0_i32_0 = arith.constant 0 : i32
    %c0_i32_1 = arith.constant 0 : i32
    return %arg0, %c0_i32, %c0_i32_0 : i32, i32, i32
  }
  func.func @transform_2(%arg0: i32) -> (i32, i32, i32) {
    %c0_i32 = arith.constant 0 : i32
    %c0_i32_0 = arith.constant 0 : i32
    %c0_i32_1 = arith.constant 0 : i32
    return %arg0, %c0_i32, %c0_i32_0 : i32, i32, i32
  }
  func.func @transform_3(%arg0: i32) -> (i32, i32, i32) {
    %c0_i32 = arith.constant 0 : i32
    %c0_i32_0 = arith.constant 0 : i32
    %c0_i32_1 = arith.constant 0 : i32
    return %arg0, %c0_i32, %c0_i32_0 : i32, i32, i32
  }
  func.func @transform_4(%arg0: i32) -> (i32, i32, i32) {
    %c0_i32 = arith.constant 0 : i32
    %c0_i32_0 = arith.constant 0 : i32
    %c0_i32_1 = arith.constant 0 : i32
    return %arg0, %c0_i32, %c0_i32_0 : i32, i32, i32
  }
}

</mosaic_0001>

<bundles_post_ra>
// kernel: tpu_custom_call.1
= control target key start
LH: loop header
LB: loop body
LE: loop exit
PB: predicated region body
PF: predicated region fallthrough
CT: control target
= control target key end

     0   :  { %vm27_vm0 = vcmask 130048   ;;  %s580_s0 = inlined_call_operand.vmem [shape: f32[2,8,16], index: 0, kind: input, shape index: {}]   ;;  %s581_s1 = inlined_call_operand.vmem [shape: s32[2,8,1], index: 1, kind: input, shape index: {}]   ;;  %s582_s2 = inlined_call_operand.vmem [shape: f32[2,4,128], index: 2, kind: input, shape index: {}]   ;;  %s583_s3 = inlined_call_operand.vmem [shape: f32[2,8,4], index: 3, kind: input, shape index: {}]   ;;  %s584_s4 = inlined_call_operand.hbm [shape: f32[2,8,128], index: 4, kind: output, shape index: {}]  }
   0x1   :  { %v497_v0 = vld [vmem:[%s580_s0] sm:$0xff]  ;;  %v502_v1 = vld [vmem:[%s580_s0 + $0x8] sm:$0xff] }
   0x2   :  { %9 = vsyncpa [#allocation3], 0  ;;  %v28_v2 = vsel %vm27_vm0, %v497_v0, -inf  ;;  %v31_v3 = vsel %vm27_vm0, %v502_v1, -inf  ;;  %v458_v4 = vmov 0   ;;  %v21_v5 = vld [vmem:[%s581_s1] sm:$0xff]  ;;  %v57_v28 = vlaneseq }
   0x3   :  { %29 = vmax.xlane.f32.xlu0 %v28_v2  ;;  %410 = vset.pattern.permute.xlu1 %v458_v4  ;;  %v22_v16 = vld [vmem:[%s581_s1 + $0x8] sm:$0xff]  ;;  %v25_v17 = vld [vmem:[%s583_s3] sm:$0xff]  ;;  %v459_v18 = vmov 0.0   ;;  %s460_s24 = smov 2   ;;  %v461_v20 = vmov 1   ;;  %vm462_vm1 = vmmov 0  }
   0x4   :  { %409 = vset.pattern.permute.xlu0 %v458_v4  ;;  %386 = vmatprep.subr.bf16.mxu0 %v459_v18  ;;  %v26_v19 = vld [vmem:[%s583_s3 + $0x8] sm:$0xff]  ;;  %v463_v21 = vmov 3   ;;  %v464_v22 = vmov 2   ;;  %s465_s1 = smov 127   ;;  %v58_v35 = vand.u32 127, %v57_v28  ;;  %v74_v57 = vshrl.u32 %v57_v28, 7 }
   0x5   :  { %392 = vmatprep.subr.bf16.mxu1 %v459_v18  ;;  %394 = vmatprep.mubr.msk.bf16.mxu1 %vm462_vm1, %v459_v18  ;;  %v23_v58 = vld [vmem:[%s582_s2] sm:$0xf] }
   0x6   :  { %388 = vmatprep.mubr.msk.bf16.mxu0 %vm462_vm1, %v459_v18  ;;  %v167_v59 = vrot.slane %v23_v58, 6  ;;  %v535_v61 = vsub.s32 2, %v74_v57  ;;  %v137_v62 = vsub.s32 3, %v74_v57  ;;  %v75_v2 = vsub.s32 0, %v74_v57 }
   0x7   :  { %32 = vmax.xlane.f32.xlu0 %v31_v3  ;;  %v24_v3 = vld [vmem:[%s582_s2 + $0x4] sm:$0xf]  ;;  %s466_s2 = smov [#allocation2]  }
   0x8   :  { %s367_s30 = sshll.u32 %s466_s2, 4  ;;  %s368_s30 = int_to_ptr.vmem [resolvable:$true] %s367_s30 }
   0x9   :  { %s434_s5 = scalar_lea.vmem %s368_s30, 256  ;;  %p439_p1 = scmp.lt.s32.totalorder %s368_s30, %s368_s30 }
   0xa   :  { %p435_p0 = scmp.ne.s32.totalorder %s368_s30, %s434_s5  ;;  %p440_p2 = scmp.lt.s32.totalorder %s434_s5, %s434_s5 }
   0xc   :  { %p441_p3 = por %p440_p2, %p439_p1 }
   0xe   :  { %p442_p4 = pnand %p441_p3, %p435_p0 }
  0x1d   :  { %60 = vperm.xlu0 %409, %v21_v5  }
  0x21   :  { %412 = vset.pattern.permute.xlu0 %v461_v20 }
  0x22   :  { %108 = vperm.xlu0 %412, %v26_v19  }
  0x26   :  { %414 = vset.pattern.permute.xlu0 %v463_v21 }
  0x27   :  { %144 = vperm.xlu0 %414, %v25_v17  }
  0x2b   :  { %417 = vset.pattern.permute.xlu0 %v464_v22 }
  0x90   :  { %v30_v6 = vpop.xlane.xlu0 %29 }
  0x91   :  { %v34_v7 = vsub.f32 %v497_v0, %v30_v6 }
  0x93   :  { %v36_v8 = vmul.f32 1.442695, %v34_v7  ;;  %v171_v7 = vsub.f32 %v23_v58, %v167_v59 }
  0x94   :  { %v33_v9 = vpop.xlane.xlu0 %32 }
  0x95   :  { %418 = vpow2.f32 %v36_v8  ;;  %v35_v10 = vsub.f32 %v502_v1, %v33_v9  ;;  %v168_v8 = vrot.slane %v24_v3, 6 }
  0x97   :  { %v38_v11 = vmul.f32 1.442695, %v35_v10  ;;  %v118_v10 = vrot.slane %v23_v58, %v535_v61 }
  0x99   :  { %420 = vpow2.f32 %v38_v11  ;;  %v138_v11 = vrot.slane %v23_v58, %v137_v62 }
  0x9c   :  { %v61_v33 = vpop.permute.xlu0 %60 }
  0x9d   :  { %vm65_vm2 = vcmp.eq.s32.totalorder %v58_v35, %v61_v33 }
  0x9e   :  { %v378_v43 = vsel %vm65_vm2, 1.0, %v459_v18 }
  0x9f   :  { %v419_v12 = vpop.eup %418  ;;  %v71_v46 = vpack.c.bf16 %v378_v43, %v378_v43 }
  0xa0   :  { %v40_v13 = vsel %vm27_vm0, %v419_v12, 0.0 }
  0xa1   :  { %41 = vadd.xlane.f32.xlu1 %v40_v13 }
  0xa3   :  { %v421_v14 = vpop.eup %420 }
  0xa4   :  { %v43_v15 = vsel %vm27_vm0, %v421_v14, 0.0 }
  0xa5   :  { %44 = vadd.xlane.f32.xlu1 %v43_v15  ;;  %v76_v15 = vrot.slane %v23_v58, %v75_v2 }
  0xb6   :  { %63 = vperm.xlu1 %410, %v22_v16  }
  0xba   :  { %181 = vrot.lane.b32.xlu1 %v25_v17, %s460_s24 }
  0xbe   :  { %183 = vrot.lane.b32.xlu1 %v26_v19, %s460_s24 }
 0x12e   :  { %v42_v23 = vpop.xlane.xlu1 %41 }
 0x12f   :  { %422 = vlog2.f32 %v42_v23 }
 0x132   :  { %v45_v24 = vpop.xlane.xlu1 %44 }
 0x133   :  { %424 = vlog2.f32 %v45_v24 }
 0x136   :  { %v64_v25 = vpop.permute.xlu1 %63 }
 0x137   :  { %vm66_vm3 = vcmp.eq.s32.totalorder %v58_v35, %v64_v25 }
 0x138   :  { %v379_v47 = vsel %vm66_vm3, 1.0, %v459_v18 }
 0x139   :  { %v423_v26 = vpop.eup %422  ;;  %v72_v48 = vpack.c.bf16 %v379_v47, %v379_v47 }
 0x13a   :  { %v47_v27 = vmul.f32 0.6931472, %v423_v26  ;;  %v182_v29 = vpop.permute.xlu1 %181 }
 0x13b   :  { %v187_v30 = vsub.f32 %v25_v17, %v182_v29  ;;  %v122_v29 = vrot.slane %v24_v3, %v535_v61 }
 0x13c   :  { %v50_v31 = vadd.f32 %v47_v27, %v30_v6 }
 0x13d   :  { %v425_v32 = vpop.eup %424  ;;  %191 = vrot.lane.b32.xlu1 %v187_v30, %s465_s1 }
 0x13e   :  { %v49_v34 = vmul.f32 0.6931472, %v425_v32  ;;  %v184_v36 = vpop.permute.xlu1 %183  ;;  %v52_v37 = vsub.f32 %v50_v31, %v497_v0  ;;  %v109_v0 = vpop.permute.xlu0 %108 }
 0x13f   :  { %v188_v38 = vsub.f32 %v26_v19, %v184_v36 }
 0x140   :  { %v51_v39 = vadd.f32 %v49_v34, %v33_v9  ;;  %v54_v40 = vpack.c.bf16 %v459_v18, %v52_v37  ;;  %v97_v9 = vsub.s32 1, %v74_v57  ;;  %v80_v34 = vrot.slane %v24_v3, %v75_v2 }
 0x141   :  { %193 = vrot.lane.b32.xlu1 %v188_v38, %s465_s1 }
 0x142   :  { %v261_v41 = vsel %vm27_vm0, %v54_v40, 0  ;;  %v53_v42 = vsub.f32 %v51_v39, %v502_v1  ;;  %v145_v13 = vpop.permute.xlu0 %144  ;;  %v98_v16 = vrot.slane %v23_v58, %v97_v9  ;;  %v102_v27 = vrot.slane %v24_v3, %v97_v9 }
 0x143   :  { %387 = vmatpush3.bf16.xpose.msra.mxu0 %v261_v41  ;;  %v547_v24 = vmax.f32 %v138_v11, %v145_v13 }
 0x144   :  { %v56_v44 = vpack.c.bf16 %v459_v18, %v53_v42  ;;  %v175_v18 = vrot.slane %v171_v7, 1  ;;  %v114_v41 = vmax.f32 %v102_v27, %v109_v0  ;;  %v112_v43 = vmin.f32 %v102_v27, %v109_v0 }
 0x145   :  { %83 = vperm.xlu1 %410, %v25_v17  }
 0x146   :  { %v310_v45 = vsel %vm27_vm0, %v56_v44, 0  ;;  %v179_v32 = vmul.f32 %v175_v18, %v171_v7 }
 0x147   :  { %393 = vmatpush3.bf16.xpose.msra.mxu1 %v310_v45 }
 0x148   :  { %v202_v45 = vrot.slane %v179_v32, %v535_v61 }
 0x149   :  { %88 = vperm.xlu1 %410, %v26_v19  }
 0x14a   :  { %389 = vmatmul.mubr.msk.bf16.vlgmr.msra.gmra.mrb[0].mxu0 %vm27_vm0, %v71_v46 }
 0x14d   :  { %411 = vset.pattern.permute.xlu1 %v461_v20 }
 0x14e   :  { %395 = vmatmul.mubr.msk.bf16.vlgmr.msra.gmra.mrb[0].mxu1 %vm27_vm0, %v72_v48  ;;  %104 = vperm.xlu1 %411, %v25_v17  }
 0x152   :  { %413 = vset.pattern.permute.xlu1 %v464_v22 }
 0x153   :  { %124 = vperm.xlu1 %413, %v25_v17  }
 0x157   :  { %128 = vperm.xlu1 %413, %v26_v19  }
 0x15b   :  { %415 = vset.pattern.permute.xlu1 %v463_v21  ;;  %v545_v21 = vmin.f32 %v138_v11, %v145_v13 }
 0x15c   :  { %148 = vperm.xlu1 %415, %v26_v19   ;;  %v172_v19 = vsub.f32 %v24_v3, %v168_v8 }
 0x15e   :  { %v176_v33 = vrot.slane %v172_v19, 1 }
 0x160   :  { %416 = vset.pattern.permute.xlu1 %v464_v22  ;;  %v142_v22 = vrot.slane %v24_v3, %v137_v62  ;;  %v180_v46 = vmul.f32 %v176_v33, %v172_v19  ;;  %v253_v19 = vsub.f32 %v547_v24, %v545_v21 }
 0x1af   :  { %v192_v49 = vpop.permute.xlu1 %191 }
 0x1b0   :  { %v197_v50 = vmul.f32 %v192_v49, %v187_v30 }
 0x1b2   :  { %209 = vperm.xlu1 %416, %v197_v50  }
 0x1b3   :  { %v194_v51 = vpop.permute.xlu1 %193 }
 0x1b4   :  { %v198_v52 = vmul.f32 %v194_v51, %v188_v38 }
 0x1b6   :  { %214 = vperm.xlu0 %417, %v198_v52  }
 0x1c4   :  { %v84_v53 = vpop.permute.xlu1 %83 }
 0x1c5   :  { %v93_v26 = vmax.f32 %v76_v15, %v84_v53  ;;  %v91_v30 = vmin.f32 %v76_v15, %v84_v53 }
 0x1c8   :  { %v89_v54 = vpop.permute.xlu1 %88 }
 0x1c9   :  { %v94_v47 = vmax.f32 %v80_v34, %v89_v54  ;;  %v92_v51 = vmin.f32 %v80_v34, %v89_v54 }
 0x1cb   :  { %v244_v15 = vsub.f32 %v94_v47, %v92_v51 }
 0x1cd   :  { %v105_v55 = vpop.permute.xlu1 %104 }
 0x1ce   :  { %v113_v28 = vmax.f32 %v98_v16, %v105_v55  ;;  %v111_v31 = vmin.f32 %v98_v16, %v105_v55  ;;  %v246_v16 = vsub.f32 %v114_v41, %v112_v43 }
 0x1d0   :  { %v159_v36 = vsub.f32 %v545_v21, %v113_v28  ;;  %v229_v39 = vsub.f32 %v547_v24, %v111_v31  ;;  %v245_v11 = vsub.f32 %v113_v28, %v111_v31  ;;  %v248_v28 = vadd.f32 %v246_v16, %v244_v15 }
 0x1d2   :  { %v125_v56 = vpop.permute.xlu1 %124  ;;  %v161_v49 = vmax.f32 %v159_v36, 0.0 }
 0x1d3   :  { %v543_v20 = vmin.f32 %v118_v10, %v125_v56  ;;  %v133_v23 = vmax.f32 %v118_v10, %v125_v56 }
 0x1d5   :  { %v155_v35 = vsub.f32 %v543_v20, %v93_v26  ;;  %v227_v38 = vsub.f32 %v133_v23, %v91_v30  ;;  %v249_v13 = vsub.f32 %v133_v23, %v543_v20 }
 0x1d6   :  { %v129_v5 = vpop.permute.xlu1 %128 }
 0x1d7   :  { %v132_v42 = vmin.f32 %v122_v29, %v129_v5  ;;  %v134_v44 = vmax.f32 %v122_v29, %v129_v5  ;;  %v157_v48 = vmax.f32 %v155_v35, 0.0  ;;  %v231_v52 = vmul.f32 %v229_v39, %v227_v38 }
 0x1d9   :  { %v156_v55 = vsub.f32 %v132_v42, %v94_v47  ;;  %v228_v56 = vsub.f32 %v134_v44, %v92_v51  ;;  %v163_v59 = vmul.f32 %v161_v49, %v157_v48  ;;  %v235_v0 = vadd.f32 1e-08, %v231_v52 }
 0x1db   :  { %v149_v25 = vpop.permute.xlu1 %148  ;;  %v158_v2 = vmax.f32 %v156_v55, 0.0  ;;  %426 = vrcp.f32 %v235_v0 }
 0x1dc   :  { %v552_v37 = vmin.f32 %v142_v22, %v149_v25  ;;  %v555_v40 = vmax.f32 %v142_v22, %v149_v25  ;;  %v250_v25 = vsub.f32 %v134_v44, %v132_v42 }
 0x1de   :  { %v160_v50 = vsub.f32 %v552_v37, %v114_v41  ;;  %v230_v53 = vsub.f32 %v555_v40, %v112_v43  ;;  %v254_v20 = vsub.f32 %v555_v40, %v552_v37  ;;  %v252_v34 = vadd.f32 %v250_v25, %v248_v28 }
 0x1e0   :  { %v162_v58 = vmax.f32 %v160_v50, 0.0  ;;  %v256_v24 = vadd.f32 %v254_v20, %v252_v34 }
 0x1e2   :  { %v164_v7 = vmul.f32 %v162_v58, %v158_v2 }
 0x21d   :  { %v533_v60 = vpop.f32.mrb[0].mxu0 }
 0x21e   :  { %v390_v63 = vpop.f32.mrb[1].mxu0 }
 0x21f   :  { %v303_v1 = vpop.f32.mrb[2].mxu0  ;;  %v206_v63 = vrot.slane %v180_v46, %v535_v61 }
 0x220   :  { %v391_v4 = vpop.f32.mrb[3].mxu0  ;;  %v232_v1 = vmul.f32 %v230_v53, %v228_v56 }
 0x221   :  { %v540_v6 = vpop.f32.mrb[0].mxu1 }
 0x222   :  { %v396_v12 = vpop.f32.mrb[1].mxu1  ;;  %v236_v54 = vadd.f32 1e-08, %v232_v1  ;;  %v347_v42 = vadd.f32 10.0, %v540_v6 }
 0x223   :  { %v349_v14 = vpop.f32.mrb[2].mxu1  ;;  %v243_v12 = vsub.f32 %v93_v26, %v91_v30  ;;  %v301_v26 = vadd.f32 10.0, %v533_v60 }
 0x224   :  { %v397_v17 = vpop.f32.mrb[3].mxu1 }
 0x225   :  { %v247_v61 = vadd.f32 %v245_v11, %v243_v12  ;;  %v427_v17 = vpop.eup %426 }
 0x227   :  { %v251_v18 = vadd.f32 %v249_v13, %v247_v61 }
 0x229   :  { %v255_v33 = vadd.f32 %v253_v19, %v251_v18 }
 0x22b   :  { %v356_v21 = vmul.f32 0.25, %v255_v33 }
 0x231   :  { %v210_v57 = vpop.permute.xlu1 %209 }
 0x232   :  { %v217_v62 = vadd.f32 %v210_v57, %v202_v45  ;;  %v357_v45 = vmul.f32 0.25, %v256_v24 }
 0x234   :  { %v219_v3 = vsub.f32 %v217_v62, %v163_v59 }
 0x235   :  { %v215_v4 = vpop.permute.xlu0 %214 }
 0x236   :  { %v221_v5 = vadd.f32 1e-08, %v219_v3  ;;  %v218_v8 = vadd.f32 %v215_v4, %v206_v63  ;;  %v233_v14 = vsub.f32 %v231_v52, %v219_v3 }
 0x238   :  { %428 = vrcp.f32 %v221_v5  ;;  %v220_v9 = vsub.f32 %v218_v8, %v164_v7  ;;  %v238_v29 = vmul.f32 %v427_v17, %v233_v14 }
 0x239   :  { %430 = vrcp.f32 %v236_v54 }
 0x23a   :  { %v222_v10 = vadd.f32 1e-08, %v220_v9  ;;  %v234_v32 = vsub.f32 %v232_v1, %v220_v9 }
 0x23c   :  { %432 = vrcp.f32 %v222_v10 }
 0x242   :  { %v429_v22 = vpop.eup %428 }
 0x243   :  { %v224_v27 = vmul.f32 %v429_v22, %v163_v59  ;;  %v431_v31 = vpop.eup %430 }
 0x244   :  { %v240_v36 = vmul.f32 %v431_v31, %v234_v32 }
 0x245   :  { %v241_v23 = vsub.f32 %v224_v27, %v238_v29 }
 0x246   :  { %v433_v30 = vpop.eup %432 }
 0x247   :  { %v226_v35 = vmul.f32 %v433_v30, %v164_v7  ;;  %v352_v38 = vmul.f32 10.0, %v241_v23 }
 0x249   :  { %v242_v39 = vsub.f32 %v226_v35, %v240_v36  ;;  %v354_v41 = vsub.f32 %v301_v26, %v352_v38 }
 0x24b   :  { %v353_v43 = vmul.f32 10.0, %v242_v39  ;;  %v358_v44 = vadd.f32 %v356_v21, %v354_v41 }
 0x24d   :  { %360 = vst [vmem:[#allocation2] sm:$0xff] %v358_v44  ;;  %v355_v37 = vsub.f32 %v347_v42, %v353_v43 }
 0x24f   :  { %v359_v40 = vadd.f32 %v357_v45, %v355_v37 }
 0x251   :  { %361 = vst [vmem:[#allocation2 + $0x8] sm:$0xff] %v359_v40 }
 0x252   :  { %445 = shalt.err (!%p442_p4)
}
 0x253   :  { %s446_s8 = scalar_lea.hbm %s584_s4, 256 }
 0x254   :  { %p447_p5 = scmp.ne.s32.totalorder %s584_s4, %s446_s8  ;;  %p450_p6 = scmp.lt.u32.totalorder %s446_s8, %s584_s4 }
 0x256   :  { %p452_p7 = pnand %p450_p6, %p447_p5 }
 0x258   :  { %455 = shalt.err (!%p452_p7)
}
 0x259   :  { %s467_s13 = smov 128   ;;  %s468_s14 = smov 8  }
 0x25a   :  { %373 = dma.vmem_to_hbm [thread:$0]  %s368_s30, 256, %s584_s4, [#allocation3], %s467_s13, %s467_s13, %s468_s14  }
 0x25b   :  { %456 = dma.done.wait [#allocation3], 256  }
 0x25c   :  { %457 = vsyncadd [#allocation3], 4294967040 }
 0x25d   :  { %377 = vsyncpa [#allocation3], 1 }

</bundles_post_ra>
